<compile_context>
chip_gen: v7x
topology: tpu7x:2x2x1
jax: 0.10.0
libtpu: 0.0.40
codegen_flags: <defaults>
</compile_context>

<pallas_src>
import math

import jax
import jax.numpy as jnp
from jax.experimental import pallas as pl
from jax.experimental.pallas import tpu as pltpu


def _round_up(x, m):
    return (x + m - 1) // m * m


def _vmem_ceiling():
    """Generation-aware VMEM ceiling: ~56 MiB on v7x (64 MiB), ~100 MiB on v5e/v6e."""
    try:
        cap = int(pltpu.get_tpu_info().vmem_capacity_bytes)
    except Exception:
        cap = 64 * 2**20
    return max(min(cap - 8 * 2**20, 100 * 2**20), 16 * 2**20)


def _vmem_limit(requested_bytes):
    return int(max(min(int(requested_bytes), _vmem_ceiling()), 16 * 2**20))


# -----------------------------------------------------------------------------
# Kernel 1: MLP   z = lin2(relu(lin1(x)))       (dropouts identity in eval mode)
# -----------------------------------------------------------------------------
def mlp_kernel(x_ref, w1_ref, b1_ref, w2_ref, b2_ref, z_ref):
    # bf16 MXU operands, f32 accumulation; bias-add / ReLU stay in f32.
    h = jnp.dot(x_ref[...], w1_ref[...], preferred_element_type=jnp.float32)
    h = jnp.maximum(h + b1_ref[...], 0.0)
    z_ref[...] = jnp.dot(h.astype(jnp.bfloat16), w2_ref[...],
                         preferred_element_type=jnp.float32) + b2_ref[...]


def mlp_forward(x_pad, w1_pad, b1_pad, w2_pad, b2_pad, *, row_tile):
    n_pad, in_pad = x_pad.shape
    hid_pad = w1_pad.shape[1]
    cls_pad = w2_pad.shape[1]
    # VMEM accounting: double-buffered x/out tiles, double-buffered (constant-index)
    # weights and biases, the h intermediate (+ its bf16 copy), 20% headroom.
    footprint = (2 * row_tile * in_pad * 2          # x tile (bf16) x2 buffers
                 + 2 * in_pad * hid_pad * 2         # W1 (bf16)
                 + 2 * hid_pad * 4                  # b1 (f32)
                 + 2 * hid_pad * cls_pad * 2        # W2 (bf16)
                 + 2 * cls_pad * 4                  # b2 (f32)
                 + 2 * row_tile * cls_pad * 4       # out tile (f32) x2 buffers
                 + row_tile * hid_pad * (4 + 2))    # h (f32) + bf16 copy
    footprint = int(footprint * 1.2)
    return pl.pallas_call(
        mlp_kernel,
        out_shape=jax.ShapeDtypeStruct((n_pad, cls_pad), jnp.float32),
        grid=(n_pad // row_tile,),
        in_specs=[
            pl.BlockSpec((row_tile, in_pad), lambda i: (i, 0)),   # x row tile (bf16)
            pl.BlockSpec((in_pad, hid_pad), lambda i: (0, 0)),    # W1 (bf16, resident)
            pl.BlockSpec((1, hid_pad), lambda i: (0, 0)),         # b1 (f32)
            pl.BlockSpec((hid_pad, cls_pad), lambda i: (0, 0)),   # W2 (bf16, resident)
            pl.BlockSpec((1, cls_pad), lambda i: (0, 0)),         # b2 (f32)
        ],
        out_specs=pl.BlockSpec((row_tile, cls_pad), lambda i: (i, 0)),
        compiler_params=pltpu.CompilerParams(
            dimension_semantics=("parallel",),                    # megacore on v7x
            vmem_limit_bytes=_vmem_limit(footprint),
        ),
    )(x_pad, w1_pad, b1_pad, w2_pad, b2_pad)


# -----------------------------------------------------------------------------
# Kernel 2a: Bern_prop, fully-resident Horner (small graphs: L DMA'd once)
# -----------------------------------------------------------------------------
def make_bern_resident_kernel(K):
    def kernel(theta_ref, L_ref, z_ref, out_ref):
        L = L_ref[...]               # [n_pad, n_pad] bf16
        z = z_ref[...]               # [n_pad, cls_pad] f32

        def hop(v):                  # L @ v : bf16 MXU inputs, f32 accumulation
            return jnp.dot(L, v.astype(jnp.bfloat16),
                           preferred_element_type=jnp.float32)

        # tmp[j] = (2I - L)^j z with (2I - L) v computed as 2v - L v; chain kept f32.
        tmp = [z]
        cur = z
        for _ in range(K):
            cur = 2.0 * cur - hop(cur)
            tmp.append(cur)

        # Horner (L and 2I-L commute):
        #   acc = theta_K tmp[0];  for j=K-1..0: acc = L @ acc + theta_j tmp[K-j]
        # => sum_k theta_k L^k (2I-L)^{K-k} z with only 2K L-matmuls total.
        acc = theta_ref[K] * tmp[0]
        for j in range(K - 1, -1, -1):
            acc = hop(acc) + theta_ref[j] * tmp[K - j]
        out_ref[...] = acc

    return kernel


def bern_prop_resident(z_pad, L_bf16, theta, K):
    n_pad, cls_pad = z_pad.shape
    footprint = (2 * L_bf16.size * 2                   # L bf16, default 2 buffers
                 + 2 * 2 * n_pad * cls_pad * 4         # z / out, 2 buffers each
                 + (K + 3) * n_pad * cls_pad * 4)      # tmp chain + acc (f32)
    footprint = int(footprint * 1.2)
    return pl.pallas_call(
        make_bern_resident_kernel(K),
        out_shape=jax.ShapeDtypeStruct((n_pad, cls_pad), jnp.float32),
        grid=(1,),
        in_specs=[
            pl.BlockSpec(memory_space=pltpu.MemorySpace.SMEM),   # theta[K+1]
            pl.BlockSpec((n_pad, n_pad), lambda i: (0, 0)),      # L (bf16)
            pl.BlockSpec((n_pad, cls_pad), lambda i: (0, 0)),    # z
        ],
        out_specs=pl.BlockSpec((n_pad, cls_pad), lambda i: (0, 0)),
        compiler_params=pltpu.CompilerParams(
            dimension_semantics=("arbitrary",),
            vmem_limit_bytes=_vmem_limit(footprint),
        ),
    )(theta, L_bf16, z_pad)


# -----------------------------------------------------------------------------
# Kernel 2b: Bern_prop, row/k-tiled per-hop kernel (v7x megacore / large graphs)
#   One hop computes  out = coef[0] * (L @ v) + coef[1] * w   row-tiled, with a
#   k-tiled contraction and an f32 VMEM accumulator.
# -----------------------------------------------------------------------------
def hop_kernel(coef_ref, L_ref, v_ref, w_ref, out_ref, acc_ref):
    k = pl.program_id(1)

    @pl.when(k == 0)
    def _():
        acc_ref[...] = jnp.zeros_like(acc_ref)

    acc_ref[...] += jnp.dot(L_ref[...], v_ref[...].astype(jnp.bfloat16),
                            preferred_element_type=jnp.float32)

    @pl.when(k == pl.num_programs(1) - 1)
    def _():
        out_ref[...] = coef_ref[0] * acc_ref[...] + coef_ref[1] * w_ref[...]


def _hop_call(L_bf16, v, w, a, c, *, tr, tk):
    n_pad, cls_pad = v.shape
    coefs = jnp.stack([jnp.asarray(a, jnp.float32), jnp.asarray(c, jnp.float32)])
    footprint = (2 * tr * tk * 2            # L tile (bf16) x2 buffers
                 + 2 * tk * cls_pad * 4     # v k-tile x2 buffers
                 + 2 * tr * cls_pad * 4     # w row-tile x2 buffers
                 + 2 * tr * cls_pad * 4     # out row-tile x2 buffers
                 + tr * cls_pad * 4)        # accumulator
    footprint = int(footprint * 1.3)
    return pl.pallas_call(
        hop_kernel,
        out_shape=jax.ShapeDtypeStruct((n_pad, cls_pad), jnp.float32),
        grid=(n_pad // tr, n_pad // tk),
        in_specs=[
            pl.BlockSpec(memory_space=pltpu.MemorySpace.SMEM),     # (a, c) scalars
            pl.BlockSpec((tr, tk), lambda i, k: (i, k)),           # L tile (bf16)
            pl.BlockSpec((tk, cls_pad), lambda i, k: (k, 0)),      # v contraction tile
            pl.BlockSpec((tr, cls_pad), lambda i, k: (i, 0)),      # w row tile
        ],
        out_specs=pl.BlockSpec((tr, cls_pad), lambda i, k: (i, 0)),
        scratch_shapes=[pltpu.VMEM((tr, cls_pad), jnp.float32)],
        compiler_params=pltpu.CompilerParams(
            dimension_semantics=("parallel", "arbitrary"),
            vmem_limit_bytes=_vmem_limit(footprint),
        ),
    )(coefs, L_bf16, v, w)


def bern_prop_tiled(z_pad, L_bf16, theta, K, *, tr=256, tk=256):
    """Row-tiled Horner: 2K tiled hop kernels; parallel row axis uses both v7x TCs."""
    if K == 0:
        return theta[0] * z_pad
    tmp = [z_pad]
    cur = z_pad
    for _ in range(K):
        # (2I - L) v  ==  -1 * (L @ v) + 2 * v
        cur = _hop_call(L_bf16, cur, cur, -1.0, 2.0, tr=tr, tk=tk)
        tmp.append(cur)
    # First Horner step folds the theta_K scaling into the matmul coefficient:
    #   acc = theta_K * (L @ tmp[0]) + theta_{K-1} * tmp[1]
    acc = _hop_call(L_bf16, tmp[0], tmp[1], theta[K], theta[K - 1], tr=tr, tk=tk)
    for j in range(K - 2, -1, -1):
        acc = _hop_call(L_bf16, acc, tmp[K - j], 1.0, theta[j], tr=tr, tk=tk)
    return acc


# -----------------------------------------------------------------------------
# Wrapper: lane-dense padding, bf16 casts, path selection, de-padding.
# -----------------------------------------------------------------------------
def bernnet_forward(x, w1, b1, w2, b2, L, temp, K, *, row_tile=256, force_tiled=False):
    N, in_dim = x.shape
    n_hid = w1.shape[1]
    n_cls = w2.shape[1]

    in_pad = _round_up(in_dim, 128)
    hid_pad = _round_up(n_hid, 128)
    cls_pad = _round_up(n_cls, 128)          # lane-dense propagated feature width
    n_pad = _round_up(N, row_tile)           # node dim stays padded through BOTH kernels

    # bf16 MXU operands for the MLP; biases stay f32.
    x_p = jnp.zeros((n_pad, in_pad), jnp.float32).at[:N, :in_dim].set(x).astype(jnp.bfloat16)
    w1_p = jnp.zeros((in_pad, hid_pad), jnp.float32).at[:in_dim, :n_hid].set(w1).astype(jnp.bfloat16)
    b1_p = jnp.zeros((1, hid_pad), jnp.float32).at[:, :n_hid].set(b1)
    w2_p = jnp.zeros((hid_pad, cls_pad), jnp.float32).at[:n_hid, :n_cls].set(w2).astype(jnp.bfloat16)
    b2_p = jnp.zeros((1, cls_pad), jnp.float32).at[:, :n_cls].set(b2)

    # Zero-padded L rows/cols never contaminate real rows under (a*(Lv) + b*v + c*w),
    # so z is fed to the prop at n_pad with no inter-kernel slice.
    L_p = jnp.zeros((n_pad, n_pad), jnp.float32).at[:N, :N].set(L).astype(jnp.bfloat16)

    z_pad = mlp_forward(x_p, w1_p, b1_p, w2_p, b2_p, row_tile=row_tile)

    binom = jnp.asarray([math.comb(K, k) / (2.0 ** K) for k in range(K + 1)], jnp.float32)
    theta = jnp.maximum(temp, 0.0) * binom   # theta_k = relu(temp_k) * C(K,k)/2^K

    # Resident single-call kernel when L + Horner working set fit VMEM (L read once);
    # otherwise the row/k-tiled per-hop path (mandatory for big N, 2 TCs on v7x).
    resident_bytes = int((2 * 2 * n_pad * n_pad + (K + 7) * n_pad * cls_pad * 4) * 1.2)
    if (not force_tiled) and resident_bytes <= _vmem_ceiling():
        out_pad = bern_prop_resident(z_pad, L_p, theta, K)
    else:
        tile = min(256, n_pad)
        out_pad = bern_prop_tiled(z_pad, L_p, theta, K, tr=tile, tk=tile)
    return out_pad[:N, :n_cls]


# -----------------------------------------------------------------------------
# Pure-JAX reference (original O(K^2) formulation with explicit 2I-L), f32.
# -----------------------------------------------------------------------------
def bernnet_reference(x, w1, b1, w2, b2, L, M2, temp, K):
    h = jnp.maximum(x @ w1 + b1, 0.0)
    z = h @ w2 + b2
    theta = jnp.maximum(temp, 0.0)
    tmp = [z]
    cur = z
    for _ in range(K):
        cur = M2 @ cur
        tmp.append(cur)
    out = (math.comb(K, 0) / (2.0 ** K)) * theta[0] * tmp[K]
    for i in range(K):
        y = tmp[K - i - 1]
        for _ in range(i + 1):
            y = L @ y
        out = out + (math.comb(K, i + 1) / (2.0 ** K)) * theta[i + 1] * y
    return out


def build_graph_operators(edge_index, num_nodes):
    """Dense sym-normalized Laplacian L = I - D^-1/2 A D^-1/2 and 2I - L."""
    src, dst = edge_index
    A = jnp.zeros((num_nodes, num_nodes), jnp.float32).at[dst, src].add(1.0)
    deg = A.sum(axis=1)
    dinv = jnp.where(deg > 0, 1.0 / jnp.sqrt(deg), 0.0)
    A_norm = dinv[:, None] * A * dinv[None, :]
    I = jnp.eye(num_nodes, dtype=jnp.float32)
    L = I - A_norm
    M2 = 2.0 * I - L
    return L, M2


if __name__ == "__main__":
    # Small, deterministic configuration.
    N, in_dim, n_hid, n_classes, K = 16, 16, 32, 8, 4

    key = jax.random.PRNGKey(0)
    kx, kw1, kb1, kw2, kb2 = jax.random.split(key, 5)

    # Node features.
    x = jax.random.normal(kx, (N, in_dim), dtype=jnp.float32)

    # Undirected cycle graph on N nodes: edge_index is [2, 2N].
    fwd = jnp.stack([jnp.arange(N), (jnp.arange(N) + 1) % N])
    edge_index = jnp.concatenate([fwd, fwd[::-1]], axis=1).astype(jnp.int32)
    L, M2 = build_graph_operators(edge_index, N)

    # Deterministic parameter init (uniform(-1/sqrt(fan_in), +), like nn.Linear).
    b1w = 1.0 / math.sqrt(in_dim)
    b2w = 1.0 / math.sqrt(n_hid)
    w1 = jax.random.uniform(kw1, (in_dim, n_hid), jnp.float32, -b1w, b1w)     # lin1.weight^T
    b1 = jax.random.uniform(kb1, (1, n_hid), jnp.float32, -b1w, b1w)          # lin1.bias
    w2 = jax.random.uniform(kw2, (n_hid, n_classes), jnp.float32, -b2w, b2w)  # lin2.weight^T
    b2 = jax.random.uniform(kb2, (1, n_classes), jnp.float32, -b2w, b2w)      # lin2.bias
    temp = jnp.ones((K + 1,), jnp.float32)  # Bern_prop.temp (reset_parameters -> 1)

    ref = bernnet_reference(x, w1, b1, w2, b2, L, M2, temp, K)

    # Default (resident Bern_prop) path.
    out = bernnet_forward(x, w1, b1, w2, b2, L, temp, K)
    out = jax.block_until_ready(out)
    assert out.shape == (N, n_classes)
    # Tolerance loosened vs f32: both the MLP and the propagation run bf16 on the MXU.
    assert jnp.allclose(out, ref, atol=3e-2, rtol=3e-2), "resident path mismatch vs. reference"

    # Row/k-tiled Bern_prop path (the one used for large graphs / v7x sharding).
    out_t = bernnet_forward(x, w1, b1, w2, b2, L, temp, K, force_tiled=True)
    out_t = jax.block_until_ready(out_t)
    assert out_t.shape == (N, n_classes)
    assert jnp.allclose(out_t, ref, atol=3e-2, rtol=3e-2), "tiled path mismatch vs. reference"

    print("KERNEL_OK")
</pallas_src>

<mosaic_0001>
module attributes {stable_mosaic.version = 11 : i64} {
  func.func @mlp_kernel(%arg0: i32, %arg1: memref<256x128xbf16, #tpu.memory_space<vmem>>, %arg2: memref<128x128xbf16, #tpu.memory_space<vmem>>, %arg3: memref<1x128xf32, #tpu.memory_space<vmem>>, %arg4: memref<128x128xbf16, #tpu.memory_space<vmem>>, %arg5: memref<1x128xf32, #tpu.memory_space<vmem>>, %arg6: memref<256x128xf32, #tpu.memory_space<vmem>>) attributes {dimension_semantics = [#tpu.dimension_semantics<parallel>], iteration_bounds = array<i64: 1>, scalar_prefetch = 0 : i64, scratch_operands = 0 : i64, tpu.core_type = #tpu.core_type<tc>, window_params = [{transform_indices = @transform_0, window_bounds = array<i64: 256, 128>}, {pipeline_mode = #tpu.pipeline_mode<synchronous>, transform_indices = @transform_1, window_bounds = array<i64: 128, 128>}, {pipeline_mode = #tpu.pipeline_mode<synchronous>, transform_indices = @transform_2, window_bounds = array<i64: 1, 128>}, {pipeline_mode = #tpu.pipeline_mode<synchronous>, transform_indices = @transform_3, window_bounds = array<i64: 128, 128>}, {pipeline_mode = #tpu.pipeline_mode<synchronous>, transform_indices = @transform_4, window_bounds = array<i64: 1, 128>}, {transform_indices = @transform_5, window_bounds = array<i64: 256, 128>}]} {
    %c0 = arith.constant 0 : index
    %c0_0 = arith.constant 0 : index
    %0 = vector.load %arg1[%c0, %c0_0] : memref<256x128xbf16, #tpu.memory_space<vmem>>, vector<256x128xbf16>
    %c0_1 = arith.constant 0 : index
    %c0_2 = arith.constant 0 : index
    %1 = vector.load %arg2[%c0_1, %c0_2] : memref<128x128xbf16, #tpu.memory_space<vmem>>, vector<128x128xbf16>
    %cst = arith.constant dense<0.000000e+00> : vector<256x128xf32>
    %2 = tpu.matmul %0, %1, %cst {dimension_numbers = #tpu.dot_dimension_numbers<[1], [0], [0], [1], [0, 0, 1, 1], [], []>} : vector<256x128xbf16>, vector<128x128xbf16>, vector<256x128xf32> -> vector<256x128xf32>
    %c0_3 = arith.constant 0 : index
    %c0_4 = arith.constant 0 : index
    %3 = vector.load %arg3[%c0_3, %c0_4] : memref<1x128xf32, #tpu.memory_space<vmem>>, vector<1x128xf32>
    %4 = vector.broadcast %3 : vector<1x128xf32> to vector<256x128xf32>
    %5 = arith.addf %2, %4 : vector<256x128xf32>
    %cst_5 = arith.constant 0.000000e+00 : f32
    %6 = vector.broadcast %cst_5 : f32 to vector<256x128xf32>
    %7 = arith.maximumf %5, %6 : vector<256x128xf32>
    %8 = arith.truncf %7 : vector<256x128xf32> to vector<256x128xbf16>
    %c0_6 = arith.constant 0 : index
    %c0_7 = arith.constant 0 : index
    %9 = vector.load %arg4[%c0_6, %c0_7] : memref<128x128xbf16, #tpu.memory_space<vmem>>, vector<128x128xbf16>
    %cst_8 = arith.constant dense<0.000000e+00> : vector<256x128xf32>
    %10 = tpu.matmul %8, %9, %cst_8 {dimension_numbers = #tpu.dot_dimension_numbers<[1], [0], [0], [1], [0, 0, 1, 1], [], []>} : vector<256x128xbf16>, vector<128x128xbf16>, vector<256x128xf32> -> vector<256x128xf32>
    %c0_9 = arith.constant 0 : index
    %c0_10 = arith.constant 0 : index
    %11 = vector.load %arg5[%c0_9, %c0_10] : memref<1x128xf32, #tpu.memory_space<vmem>>, vector<1x128xf32>
    %12 = vector.broadcast %11 : vector<1x128xf32> to vector<256x128xf32>
    %13 = arith.addf %10, %12 : vector<256x128xf32>
    %c0_11 = arith.constant 0 : index
    %c0_12 = arith.constant 0 : index
    %14 = vector.load %arg6[%c0_11, %c0_12] : memref<256x128xf32, #tpu.memory_space<vmem>>, vector<256x128xf32>
    tpu.vector_store %arg6[%c0_11, %c0_12], %13 {strides = array<i32>} : memref<256x128xf32, #tpu.memory_space<vmem>>, vector<256x128xf32>,
    return
  }
  func.func @transform_0(%arg0: i32) -> (i32, i32) {
    %c0_i32 = arith.constant 0 : i32
    %c0_i32_0 = arith.constant 0 : i32
    return %arg0, %c0_i32 : i32, i32
  }
  func.func @transform_1(%arg0: i32) -> (i32, i32) {
    %c0_i32 = arith.constant 0 : i32
    %c0_i32_0 = arith.constant 0 : i32
    %c0_i32_1 = arith.constant 0 : i32
    return %c0_i32, %c0_i32_0 : i32, i32
  }
  func.func @transform_2(%arg0: i32) -> (i32, i32) {
    %c0_i32 = arith.constant 0 : i32
    %c0_i32_0 = arith.constant 0 : i32
    %c0_i32_1 = arith.constant 0 : i32
    return %c0_i32, %c0_i32_0 : i32, i32
  }
  func.func @transform_3(%arg0: i32) -> (i32, i32) {
    %c0_i32 = arith.constant 0 : i32
    %c0_i32_0 = arith.constant 0 : i32
    %c0_i32_1 = arith.constant 0 : i32
    return %c0_i32, %c0_i32_0 : i32, i32
  }
  func.func @transform_4(%arg0: i32) -> (i32, i32) {
    %c0_i32 = arith.constant 0 : i32
    %c0_i32_0 = arith.constant 0 : i32
    %c0_i32_1 = arith.constant 0 : i32
    return %c0_i32, %c0_i32_0 : i32, i32
  }
  func.func @transform_5(%arg0: i32) -> (i32, i32) {
    %c0_i32 = arith.constant 0 : i32
    %c0_i32_0 = arith.constant 0 : i32
    return %arg0, %c0_i32 : i32, i32
  }
}

</mosaic_0001>

<bundles_post_ra>
// kernel: tpu_custom_call.1
= control target key start
LH: loop header
LB: loop body
LE: loop exit
PB: predicated region body
PF: predicated region fallthrough
CT: control target
= control target key end

     0   :  { %10 = vsyncpa [#allocation3], 0  ;;  %s1241_s0 = inlined_call_operand.hbm [shape: bf16[256,128], index: 0, kind: input, shape index: {}]   ;;  %s1242_s1 = inlined_call_operand.hbm [shape: bf16[128,128], index: 1, kind: input, shape index: {}]   ;;  %s1243_s2 = inlined_call_operand.vmem [shape: f32[1,128], index: 2, kind: input, shape index: {}]   ;;  %s1244_s3 = inlined_call_operand.hbm [shape: bf16[128,128], index: 3, kind: input, shape index: {}]   ;;  %s1245_s4 = inlined_call_operand.vmem [shape: f32[1,128], index: 4, kind: input, shape index: {}]   ;;  %s1246_s5 = inlined_call_operand.hbm [shape: f32[256,128], index: 5, kind: output, shape index: {}]  }
   0x1   :  { %11 = vsyncpa [#allocation6], 0 }
   0x2   :  { %12 = vsyncpa [#allocation4], 0  ;;  %s1065_s18 = smov [#allocation5]   ;;  %s1066_s20 = smov [#allocation2]  }
   0x3   :  { %s30_s19 = sshll.u32 %s1065_s18, 4  ;;  %s18_s21 = sshll.u32 %s1066_s20, 4  ;;  %s31_s19 = int_to_ptr.vmem [resolvable:$true] %s30_s19  ;;  %s1103_s21 = int_to_ptr.vmem [resolvable:$true] %s18_s21 }
   0x4   :  { %s971_s24 = scalar_lea.hbm %s1242_s1, 1024 }
   0x5   :  { %p972_p0 = scmp.ne.s32.totalorder %s1242_s1, %s971_s24  ;;  %p975_p1 = scmp.lt.u32.totalorder %s971_s24, %s1242_s1 }
   0x7   :  { %p977_p2 = pnand %p975_p1, %p972_p0 }
   0x9   :  { %980 = shalt.err (!%p977_p2)
}
   0xa   :  { %s981_s29 = scalar_lea.vmem %s31_s19, 1024  ;;  %p986_p4 = scmp.lt.s32.totalorder %s31_s19, %s31_s19 }
   0xb   :  { %p982_p3 = scmp.ne.s32.totalorder %s31_s19, %s981_s29  ;;  %p987_p5 = scmp.lt.s32.totalorder %s981_s29, %s981_s29 }
   0xd   :  { %p988_p6 = por %p987_p5, %p986_p4 }
   0xf   :  { %p989_p7 = pnand %p988_p6, %p982_p3 }
  0x11   :  { %992 = shalt.err (!%p989_p7)
}
  0x12   :  { %s1067_s30 = smov 64   ;;  %s1068_s6 = smov 4  }
  0x13   :  { %36 = dma.hbm_to_vmem [thread:$0]  %s1242_s1, 1024, %s31_s19, [#allocation6], %s1067_s30, %s1067_s30, %s1068_s6  }
  0x14   :  { %s993_s11 = scalar_lea.hbm %s1241_s0, 2048 }
  0x15   :  { %p994_p8 = scmp.ne.s32.totalorder %s1241_s0, %s993_s11  ;;  %p997_p9 = scmp.lt.u32.totalorder %s993_s11, %s1241_s0 }
  0x17   :  { %p999_p10 = pnand %p997_p9, %p994_p8 }
  0x19   :  { %1002 = shalt.err (!%p999_p10)
}
  0x1a   :  { %s1003_s16 = scalar_lea.vmem %s1103_s21, 2048  ;;  %p1008_p12 = scmp.lt.s32.totalorder %s1103_s21, %s1103_s21 }
  0x1b   :  { %p1004_p11 = scmp.ne.s32.totalorder %s1103_s21, %s1003_s16  ;;  %p1009_p13 = scmp.lt.s32.totalorder %s1003_s16, %s1003_s16 }
  0x1d   :  { %p1010_p0 = por %p1009_p13, %p1008_p12 }
  0x1f   :  { %p1011_p1 = pnand %p1010_p0, %p1004_p11 }
  0x21   :  { %1014 = shalt.err (!%p1011_p1)
}
  0x22   :  { %24 = dma.hbm_to_vmem [thread:$0]  %s1241_s0, 2048, %s1103_s21, [#allocation3], %s1067_s30, %s1067_s30, %s1068_s6  }
  0x23   :  { %s1069_s18 = smov [#allocation7]   ;;  %s1015_s23 = scalar_lea.hbm %s1244_s3, 1024 }
  0x24   :  { %s44_s19 = sshll.u32 %s1069_s18, 4  ;;  %p1016_p2 = scmp.ne.s32.totalorder %s1244_s3, %s1015_s23  ;;  %s45_s19 = int_to_ptr.vmem [resolvable:$true] %s44_s19 }
  0x25   :  { %p1019_p3 = scmp.lt.u32.totalorder %s1015_s23, %s1244_s3 }
  0x27   :  { %p1021_p4 = pnand %p1019_p3, %p1016_p2 }
  0x29   :  { %1024 = shalt.err (!%p1021_p4)
}
  0x2a   :  { %s1025_s28 = scalar_lea.vmem %s45_s19, 1024  ;;  %p1030_p6 = scmp.lt.s32.totalorder %s45_s19, %s45_s19 }
  0x2b   :  { %p1026_p5 = scmp.ne.s32.totalorder %s45_s19, %s1025_s28  ;;  %p1031_p7 = scmp.lt.s32.totalorder %s1025_s28, %s1025_s28 }
  0x2d   :  { %p1032_p8 = por %p1031_p7, %p1030_p6 }
  0x2f   :  { %p1033_p9 = pnand %p1032_p8, %p1026_p5 }
  0x31   :  { %1036 = shalt.err (!%p1033_p9)
}
  0x32   :  { %50 = dma.hbm_to_vmem [thread:$0]  %s1244_s3, 1024, %s45_s19, [#allocation6], %s1067_s30, %s1067_s30, %s1068_s6  }
  0x33   :  { %1059 = dma.done.wait [#allocation3], 2048  }
  0x34   :  { %1060 = vsyncadd [#allocation3], 4294965248 }
  0x35   :  { %1061 = dma.done.wait [#allocation6], 2048  }
  0x36   :  { %1062 = vsyncadd [#allocation6], 4294965248  ;;  %v939_v0 = vld [vmem:[#allocation5] sm:$0xff]   ;;  %v940_v1 = vld [vmem:[#allocation5 + $0x8] sm:$0xff]  }
  0x37   :  { %835 = vmatprep.subr.bf16.mxu0 %v939_v0  ;;  %v941_v2 = vld [vmem:[#allocation5 + $0x10] sm:$0xff]   ;;  %v942_v3 = vld [vmem:[#allocation5 + $0x18] sm:$0xff]   ;;  %v947_v4 = vld [vmem:[#allocation2] sm:$0xff]  }
  0x38   :  { %836 = vmatpush3.bf16.msra.mxu0 %v939_v0  ;;  %851 = vmatprep.mubr.bf16.mxu0 %v947_v4  ;;  %v943_v5 = vld [vmem:[#allocation5 + $0x20] sm:$0xff]   ;;  %v944_v6 = vld [vmem:[#allocation5 + $0x28] sm:$0xff]   ;;  %v945_v7 = vld [vmem:[#allocation5 + $0x30] sm:$0xff]  }
  0x39   :  { %837 = vmatprep.subr.bf16.mxu0 %v940_v1  ;;  %v946_v8 = vld [vmem:[#allocation5 + $0x38] sm:$0xff]   ;;  %v963_v9 = vld [vmem:[#allocation7] sm:$0xff]   ;;  %v964_v10 = vld [vmem:[#allocation7 + $0x8] sm:$0xff]  }
  0x3a   :  { %883 = vmatprep.subr.bf16.mxu1 %v963_v9  ;;  %v965_v11 = vld [vmem:[#allocation7 + $0x10] sm:$0xff]   ;;  %v948_v12 = vld [vmem:[#allocation2 + $0x8] sm:$0xff]   ;;  %v966_v14 = vld [vmem:[#allocation7 + $0x18] sm:$0xff]  }
  0x3b   :  { %884 = vmatpush3.bf16.msra.mxu1 %v963_v9  ;;  %v949_v13 = vld [vmem:[#allocation2 + $0x10] sm:$0xff]   ;;  %v967_v15 = vld [vmem:[#allocation7 + $0x20] sm:$0xff]   ;;  %v950_v16 = vld [vmem:[#allocation2 + $0x18] sm:$0xff]  }
  0x3c   :  { %838 = vmatpush3.bf16.msra.mxu0 %v940_v1  ;;  %885 = vmatprep.subr.bf16.mxu1 %v964_v10  ;;  %v951_v17 = vld [vmem:[#allocation2 + $0x20] sm:$0xff]   ;;  %v968_v18 = vld [vmem:[#allocation7 + $0x28] sm:$0xff]   ;;  %v953_v20 = vld [vmem:[#allocation2 + $0x30] sm:$0xff]  }
  0x3d   :  { %839 = vmatprep.subr.bf16.mxu0 %v941_v2  ;;  %v952_v19 = vld [vmem:[#allocation2 + $0x28] sm:$0xff]   ;;  %v954_v21 = vld [vmem:[#allocation2 + $0x38] sm:$0xff]   ;;  %v955_v22 = vld [vmem:[#allocation2 + $0x40] sm:$0xff]  }
  0x3e   :  { %v956_v23 = vld [vmem:[#allocation2 + $0x48] sm:$0xff]   ;;  %v957_v24 = vld [vmem:[#allocation2 + $0x50] sm:$0xff]   ;;  %v958_v25 = vld [vmem:[#allocation2 + $0x58] sm:$0xff]  }
  0x3f   :  { %886 = vmatpush3.bf16.msra.mxu1 %v964_v10  ;;  %v959_v26 = vld [vmem:[#allocation2 + $0x60] sm:$0xff]   ;;  %v960_v27 = vld [vmem:[#allocation2 + $0x68] sm:$0xff]   ;;  %v961_v28 = vld [vmem:[#allocation2 + $0x70] sm:$0xff]  }
  0x40   :  { %840 = vmatpush3.bf16.msra.mxu0 %v941_v2  ;;  %887 = vmatprep.subr.bf16.mxu1 %v965_v11  ;;  %v962_v29 = vld [vmem:[#allocation2 + $0x78] sm:$0xff]   ;;  %v969_v30 = vld [vmem:[#allocation7 + $0x30] sm:$0xff]   ;;  %v1158_v32 = vld [vmem:[%s1243_s2] ss:$0 sm:$0xff] }
  0x41   :  { %841 = vmatprep.subr.bf16.mxu0 %v942_v3  ;;  %v970_v31 = vld [vmem:[#allocation7 + $0x38] sm:$0xff]  }
  0x43   :  { %888 = vmatpush3.bf16.msra.mxu1 %v965_v11 }
  0x44   :  { %842 = vmatpush3.bf16.msra.mxu0 %v942_v3  ;;  %889 = vmatprep.subr.bf16.mxu1 %v966_v14 }
  0x45   :  { %843 = vmatprep.subr.bf16.mxu0 %v943_v5 }
  0x47   :  { %890 = vmatpush3.bf16.msra.mxu1 %v966_v14 }
  0x48   :  { %844 = vmatpush3.bf16.msra.mxu0 %v943_v5  ;;  %891 = vmatprep.subr.bf16.mxu1 %v967_v15 }
  0x49   :  { %845 = vmatprep.subr.bf16.mxu0 %v944_v6 }
  0x4b   :  { %892 = vmatpush3.bf16.msra.mxu1 %v967_v15 }
  0x4c   :  { %846 = vmatpush3.bf16.msra.mxu0 %v944_v6  ;;  %893 = vmatprep.subr.bf16.mxu1 %v968_v18 }
  0x4d   :  { %847 = vmatprep.subr.bf16.mxu0 %v945_v7 }
  0x4f   :  { %894 = vmatpush3.bf16.msra.mxu1 %v968_v18 }
  0x50   :  { %848 = vmatpush3.bf16.msra.mxu0 %v945_v7  ;;  %895 = vmatprep.subr.bf16.mxu1 %v969_v30 }
  0x51   :  { %849 = vmatprep.subr.bf16.mxu0 %v946_v8 }
  0x53   :  { %896 = vmatpush3.bf16.msra.mxu1 %v969_v30 }
  0x54   :  { %850 = vmatpush3.bf16.msra.mxu0 %v946_v8  ;;  %897 = vmatprep.subr.bf16.mxu1 %v970_v31 }
  0x57   :  { %852 = vmatmul.mubr.bf16.vlgmr.msra.gmra.mrb[0].mxu0 %v948_v12  ;;  %898 = vmatpush3.bf16.msra.mxu1 %v970_v31 }
  0x58   :  { %855 = vmatprep.mubr.bf16.mxu0 %v949_v13 }
  0x5f   :  { %856 = vmatmul.mubr.bf16.gmra.mrb[4].mxu0 %v950_v16 }
  0x60   :  { %859 = vmatprep.mubr.bf16.mxu0 %v951_v17 }
  0x67   :  { %860 = vmatmul.mubr.bf16.gmra.mrb[8].mxu0 %v952_v19 }
  0x68   :  { %863 = vmatprep.mubr.bf16.mxu0 %v953_v20 }
  0x6f   :  { %864 = vmatmul.mubr.bf16.gmra.mrb[12].mxu0 %v954_v21 }
  0x70   :  { %867 = vmatprep.mubr.bf16.mxu0 %v955_v22 }
  0x77   :  { %868 = vmatmul.mubr.bf16.gmra.mrb[16].mxu0 %v956_v23 }
  0x78   :  { %871 = vmatprep.mubr.bf16.mxu0 %v957_v24 }
  0x7f   :  { %872 = vmatmul.mubr.bf16.gmra.mrb[20].mxu0 %v958_v25 }
  0x80   :  { %875 = vmatprep.mubr.bf16.mxu0 %v959_v26 }
  0x87   :  { %876 = vmatmul.mubr.bf16.gmra.mrb[24].mxu0 %v960_v27 }
  0x88   :  { %879 = vmatprep.mubr.bf16.mxu0 %v961_v28 }
  0x8f   :  { %880 = vmatmul.mubr.bf16.gmra.mrb[28].mxu0 %v962_v29 }
 0x12a   :  { %v853_v33 = vpop.f32.mrb[0].mxu0 }
 0x12b   :  { %v305_v34 = vadd.f32 %v853_v33, %v1158_v32  ;;  %v296_v35 = vpop.f32.mrb[1].mxu0 }
 0x12c   :  { %v297_v36 = vadd.f32 %v1158_v32, %v296_v35  ;;  %v854_v37 = vpop.f32.mrb[2].mxu0 }
 0x12d   :  { %v308_v38 = vadd.f32 %v854_v37, %v1158_v32  ;;  %v299_v39 = vpop.f32.mrb[3].mxu0  ;;  %v425_v41 = vmax.f32 %v305_v34, 0.0 }
 0x12e   :  { %v300_v40 = vadd.f32 %v1158_v32, %v299_v39  ;;  %v423_v43 = vmax.f32 %v297_v36, 0.0 }
 0x12f   :  { %v426_v42 = vmax.f32 %v308_v38, 0.0 }
 0x130   :  { %v424_v44 = vmax.f32 %v300_v40, 0.0 }
 0x131   :  { %v456_v45 = vpack.c.bf16 %v426_v42, %v425_v41 }
 0x132   :  { %v857_v46 = vpop.f32.mrb[4].mxu0  ;;  %v455_v47 = vpack.c.bf16 %v424_v44, %v423_v43 }
 0x133   :  { %v321_v48 = vadd.f32 %v857_v46, %v1158_v32  ;;  %v312_v49 = vpop.f32.mrb[5].mxu0 }
 0x134   :  { %v313_v50 = vadd.f32 %v1158_v32, %v312_v49  ;;  %v858_v51 = vpop.f32.mrb[6].mxu0  ;;  %899 = vmatprep.mubr.bf16.mxu1 %v455_v47 }
 0x135   :  { %v324_v52 = vadd.f32 %v858_v51, %v1158_v32  ;;  %v315_v53 = vpop.f32.mrb[7].mxu0  ;;  %900 = vmatmul.mubr.bf16.vlgmr.msra.gmra.mrb[0].mxu1 %v456_v45  ;;  %v429_v55 = vmax.f32 %v321_v48, 0.0 }
 0x136   :  { %v316_v54 = vadd.f32 %v1158_v32, %v315_v53  ;;  %v427_v57 = vmax.f32 %v313_v50, 0.0 }
 0x137   :  { %v430_v56 = vmax.f32 %v324_v52, 0.0 }
 0x138   :  { %v428_v58 = vmax.f32 %v316_v54, 0.0 }
 0x139   :  { %v458_v59 = vpack.c.bf16 %v430_v56, %v429_v55 }
 0x13a   :  { %v457_v60 = vpack.c.bf16 %v428_v58, %v427_v57  ;;  %v861_v61 = vpop.f32.mrb[8].mxu0 }
 0x13b   :  { %v337_v62 = vadd.f32 %v861_v61, %v1158_v32  ;;  %v328_v63 = vpop.f32.mrb[9].mxu0 }
 0x13c   :  { %v329_v0 = vadd.f32 %v1158_v32, %v328_v63  ;;  %v862_v1 = vpop.f32.mrb[10].mxu0  ;;  %903 = vmatprep.mubr.bf16.mxu1 %v457_v60 }
 0x13d   :  { %v340_v2 = vadd.f32 %v862_v1, %v1158_v32  ;;  %v331_v3 = vpop.f32.mrb[11].mxu0  ;;  %904 = vmatmul.mubr.bf16.gmra.mrb[4].mxu1 %v458_v59  ;;  %v433_v5 = vmax.f32 %v337_v62, 0.0 }
 0x13e   :  { %v332_v4 = vadd.f32 %v1158_v32, %v331_v3  ;;  %v431_v7 = vmax.f32 %v329_v0, 0.0 }
 0x13f   :  { %v434_v6 = vmax.f32 %v340_v2, 0.0 }
 0x140   :  { %v432_v8 = vmax.f32 %v332_v4, 0.0 }
 0x141   :  { %v460_v9 = vpack.c.bf16 %v434_v6, %v433_v5 }
 0x142   :  { %v459_v10 = vpack.c.bf16 %v432_v8, %v431_v7  ;;  %v865_v11 = vpop.f32.mrb[12].mxu0 }
 0x143   :  { %v353_v12 = vadd.f32 %v865_v11, %v1158_v32  ;;  %v344_v13 = vpop.f32.mrb[13].mxu0 }
 0x144   :  { %v345_v14 = vadd.f32 %v1158_v32, %v344_v13  ;;  %v866_v15 = vpop.f32.mrb[14].mxu0  ;;  %907 = vmatprep.mubr.bf16.mxu1 %v459_v10 }
 0x145   :  { %v356_v16 = vadd.f32 %v866_v15, %v1158_v32  ;;  %v347_v17 = vpop.f32.mrb[15].mxu0  ;;  %908 = vmatmul.mubr.bf16.gmra.mrb[8].mxu1 %v460_v9  ;;  %v437_v19 = vmax.f32 %v353_v12, 0.0 }
 0x146   :  { %v348_v18 = vadd.f32 %v1158_v32, %v347_v17  ;;  %v435_v21 = vmax.f32 %v345_v14, 0.0 }
 0x147   :  { %v438_v20 = vmax.f32 %v356_v16, 0.0 }
 0x148   :  { %v436_v22 = vmax.f32 %v348_v18, 0.0  ;;  %v1195_v18 = vld [vmem:[%s1245_s4] ss:$0 sm:$0xff]  ;;  %s1070_s4 = smov [#allocation8]  }
 0x149   :  { %v462_v23 = vpack.c.bf16 %v438_v20, %v437_v19  ;;  %s740_s6 = sshll.u32 %s1070_s4, 4  ;;  %s741_s6 = int_to_ptr.vmem [resolvable:$true] %s740_s6 }
 0x14a   :  { %v461_v24 = vpack.c.bf16 %v436_v22, %v435_v21  ;;  %v869_v25 = vpop.f32.mrb[16].mxu0  ;;  %s1037_s7 = scalar_lea.vmem %s741_s6, 4096  ;;  %p1042_p11 = scmp.lt.s32.totalorder %s741_s6, %s741_s6 }
 0x14b   :  { %v369_v26 = vadd.f32 %v869_v25, %v1158_v32  ;;  %v360_v27 = vpop.f32.mrb[17].mxu0  ;;  %p1038_p10 = scmp.ne.s32.totalorder %s741_s6, %s1037_s7  ;;  %p1043_p12 = scmp.lt.s32.totalorder %s1037_s7, %s1037_s7 }
 0x14c   :  { %v361_v28 = vadd.f32 %v1158_v32, %v360_v27  ;;  %v870_v29 = vpop.f32.mrb[18].mxu0  ;;  %911 = vmatprep.mubr.bf16.mxu1 %v461_v24 }
 0x14d   :  { %v372_v30 = vadd.f32 %v870_v29, %v1158_v32  ;;  %v363_v31 = vpop.f32.mrb[19].mxu0  ;;  %912 = vmatmul.mubr.bf16.gmra.mrb[12].mxu1 %v462_v23  ;;  %v441_v34 = vmax.f32 %v369_v26, 0.0  ;;  %p1044_p13 = por %p1043_p12, %p1042_p11 }
 0x14e   :  { %v364_v33 = vadd.f32 %v1158_v32, %v363_v31  ;;  %v439_v36 = vmax.f32 %v361_v28, 0.0 }
 0x14f   :  { %v442_v35 = vmax.f32 %v372_v30, 0.0  ;;  %p1045_p0 = pnand %p1044_p13, %p1038_p10 }
 0x150   :  { %v440_v37 = vmax.f32 %v364_v33, 0.0 }
 0x151   :  { %v464_v38 = vpack.c.bf16 %v442_v35, %v441_v34 }
 0x152   :  { %v463_v39 = vpack.c.bf16 %v440_v37, %v439_v36  ;;  %v873_v40 = vpop.f32.mrb[20].mxu0 }
 0x153   :  { %v385_v41 = vadd.f32 %v873_v40, %v1158_v32  ;;  %v376_v42 = vpop.f32.mrb[21].mxu0 }
 0x154   :  { %v377_v43 = vadd.f32 %v1158_v32, %v376_v42  ;;  %v874_v44 = vpop.f32.mrb[22].mxu0  ;;  %915 = vmatprep.mubr.bf16.mxu1 %v463_v39 }
 0x155   :  { %v388_v45 = vadd.f32 %v874_v44, %v1158_v32  ;;  %v379_v46 = vpop.f32.mrb[23].mxu0  ;;  %916 = vmatmul.mubr.bf16.gmra.mrb[16].mxu1 %v464_v38  ;;  %v445_v48 = vmax.f32 %v385_v41, 0.0 }
 0x156   :  { %v380_v47 = vadd.f32 %v1158_v32, %v379_v46  ;;  %v443_v50 = vmax.f32 %v377_v43, 0.0 }
 0x157   :  { %v446_v49 = vmax.f32 %v388_v45, 0.0 }
 0x158   :  { %v444_v51 = vmax.f32 %v380_v47, 0.0 }
 0x159   :  { %v466_v52 = vpack.c.bf16 %v446_v49, %v445_v48 }
 0x15a   :  { %v465_v53 = vpack.c.bf16 %v444_v51, %v443_v50  ;;  %v877_v54 = vpop.f32.mrb[24].mxu0 }
 0x15b   :  { %v401_v55 = vadd.f32 %v877_v54, %v1158_v32  ;;  %v392_v56 = vpop.f32.mrb[25].mxu0 }
 0x15c   :  { %v393_v57 = vadd.f32 %v1158_v32, %v392_v56  ;;  %v878_v58 = vpop.f32.mrb[26].mxu0  ;;  %919 = vmatprep.mubr.bf16.mxu1 %v465_v53 }
 0x15d   :  { %v404_v59 = vadd.f32 %v878_v58, %v1158_v32  ;;  %v395_v60 = vpop.f32.mrb[27].mxu0  ;;  %920 = vmatmul.mubr.bf16.gmra.mrb[20].mxu1 %v466_v52  ;;  %v449_v62 = vmax.f32 %v401_v55, 0.0 }
 0x15e   :  { %v396_v61 = vadd.f32 %v1158_v32, %v395_v60  ;;  %v447_v0 = vmax.f32 %v393_v57, 0.0 }
 0x15f   :  { %v450_v63 = vmax.f32 %v404_v59, 0.0 }
 0x160   :  { %v448_v1 = vmax.f32 %v396_v61, 0.0 }
 0x161   :  { %v468_v2 = vpack.c.bf16 %v450_v63, %v449_v62 }
 0x162   :  { %v467_v3 = vpack.c.bf16 %v448_v1, %v447_v0  ;;  %v881_v4 = vpop.f32.mrb[28].mxu0 }
 0x163   :  { %v417_v5 = vadd.f32 %v881_v4, %v1158_v32  ;;  %v408_v6 = vpop.f32.mrb[29].mxu0 }
 0x164   :  { %v409_v7 = vadd.f32 %v1158_v32, %v408_v6  ;;  %v882_v8 = vpop.f32.mrb[30].mxu0  ;;  %923 = vmatprep.mubr.bf16.mxu1 %v467_v3 }
 0x165   :  { %v420_v9 = vadd.f32 %v882_v8, %v1158_v32  ;;  %v411_v10 = vpop.f32.mrb[31].mxu0  ;;  %924 = vmatmul.mubr.bf16.gmra.mrb[24].mxu1 %v468_v2  ;;  %v453_v12 = vmax.f32 %v417_v5, 0.0 }
 0x166   :  { %v412_v11 = vadd.f32 %v1158_v32, %v411_v10  ;;  %v451_v14 = vmax.f32 %v409_v7, 0.0 }
 0x167   :  { %v454_v13 = vmax.f32 %v420_v9, 0.0 }
 0x168   :  { %v452_v15 = vmax.f32 %v412_v11, 0.0 }
 0x169   :  { %v470_v16 = vpack.c.bf16 %v454_v13, %v453_v12 }
 0x16a   :  { %v469_v17 = vpack.c.bf16 %v452_v15, %v451_v14 }
 0x16c   :  { %927 = vmatprep.mubr.bf16.mxu1 %v469_v17 }
 0x16d   :  { %928 = vmatmul.mubr.bf16.gmra.mrb[28].mxu1 %v470_v16 }
 0x208   :  { %v901_v19 = vpop.f32.mrb[0].mxu1 }
 0x209   :  { %v585_v20 = vadd.f32 %v901_v19, %v1195_v18  ;;  %v576_v21 = vpop.f32.mrb[1].mxu1 }
 0x20a   :  { %v577_v22 = vadd.f32 %v1195_v18, %v576_v21  ;;  %v902_v32 = vpop.f32.mrb[2].mxu1 }
 0x20b   :  { %705 = vst [vmem:[#allocation8 + $0x10] sm:$0xff] %v585_v20  ;;  %v588_v23 = vadd.f32 %v902_v32, %v1195_v18  ;;  %v579_v24 = vpop.f32.mrb[3].mxu1 }
 0x20c   :  { %703 = vst [vmem:[#allocation8] sm:$0xff] %v577_v22  ;;  %v580_v25 = vadd.f32 %v1195_v18, %v579_v24 }
 0x20d   :  { %706 = vst [vmem:[#allocation8 + $0x18] sm:$0xff] %v588_v23 }
 0x20e   :  { %704 = vst [vmem:[#allocation8 + $0x8] sm:$0xff] %v580_v25 }
 0x210   :  { %v905_v26 = vpop.f32.mrb[4].mxu1 }
 0x211   :  { %v601_v27 = vadd.f32 %v905_v26, %v1195_v18  ;;  %v592_v28 = vpop.f32.mrb[5].mxu1 }
 0x212   :  { %v593_v29 = vadd.f32 %v1195_v18, %v592_v28  ;;  %v906_v30 = vpop.f32.mrb[6].mxu1 }
 0x213   :  { %709 = vst [vmem:[#allocation8 + $0x30] sm:$0xff] %v601_v27  ;;  %v604_v31 = vadd.f32 %v906_v30, %v1195_v18  ;;  %v595_v33 = vpop.f32.mrb[7].mxu1 }
 0x214   :  { %707 = vst [vmem:[#allocation8 + $0x20] sm:$0xff] %v593_v29  ;;  %v596_v34 = vadd.f32 %v1195_v18, %v595_v33 }
 0x215   :  { %710 = vst [vmem:[#allocation8 + $0x38] sm:$0xff] %v604_v31 }
 0x216   :  { %708 = vst [vmem:[#allocation8 + $0x28] sm:$0xff] %v596_v34 }
 0x218   :  { %v909_v35 = vpop.f32.mrb[8].mxu1 }
 0x219   :  { %v617_v36 = vadd.f32 %v909_v35, %v1195_v18  ;;  %v608_v37 = vpop.f32.mrb[9].mxu1 }
 0x21a   :  { %v609_v38 = vadd.f32 %v1195_v18, %v608_v37  ;;  %v910_v39 = vpop.f32.mrb[10].mxu1 }
 0x21b   :  { %713 = vst [vmem:[#allocation8 + $0x50] sm:$0xff] %v617_v36  ;;  %v620_v40 = vadd.f32 %v910_v39, %v1195_v18  ;;  %v611_v41 = vpop.f32.mrb[11].mxu1 }
 0x21c   :  { %711 = vst [vmem:[#allocation8 + $0x40] sm:$0xff] %v609_v38  ;;  %v612_v42 = vadd.f32 %v1195_v18, %v611_v41 }
 0x21d   :  { %714 = vst [vmem:[#allocation8 + $0x58] sm:$0xff] %v620_v40 }
 0x21e   :  { %712 = vst [vmem:[#allocation8 + $0x48] sm:$0xff] %v612_v42 }
 0x220   :  { %v913_v43 = vpop.f32.mrb[12].mxu1 }
 0x221   :  { %v633_v44 = vadd.f32 %v913_v43, %v1195_v18  ;;  %v624_v45 = vpop.f32.mrb[13].mxu1 }
 0x222   :  { %v625_v46 = vadd.f32 %v1195_v18, %v624_v45  ;;  %v914_v47 = vpop.f32.mrb[14].mxu1 }
 0x223   :  { %717 = vst [vmem:[#allocation8 + $0x70] sm:$0xff] %v633_v44  ;;  %v636_v48 = vadd.f32 %v914_v47, %v1195_v18  ;;  %v627_v49 = vpop.f32.mrb[15].mxu1 }
 0x224   :  { %715 = vst [vmem:[#allocation8 + $0x60] sm:$0xff] %v625_v46  ;;  %v628_v50 = vadd.f32 %v1195_v18, %v627_v49 }
 0x225   :  { %718 = vst [vmem:[#allocation8 + $0x78] sm:$0xff] %v636_v48 }
 0x226   :  { %716 = vst [vmem:[#allocation8 + $0x68] sm:$0xff] %v628_v50 }
 0x228   :  { %v917_v51 = vpop.f32.mrb[16].mxu1 }
 0x229   :  { %v649_v52 = vadd.f32 %v917_v51, %v1195_v18  ;;  %v640_v53 = vpop.f32.mrb[17].mxu1 }
 0x22a   :  { %v641_v54 = vadd.f32 %v1195_v18, %v640_v53  ;;  %v918_v55 = vpop.f32.mrb[18].mxu1 }
 0x22b   :  { %721 = vst [vmem:[#allocation8 + $0x90] sm:$0xff] %v649_v52  ;;  %v652_v56 = vadd.f32 %v918_v55, %v1195_v18  ;;  %v643_v57 = vpop.f32.mrb[19].mxu1 }
 0x22c   :  { %719 = vst [vmem:[#allocation8 + $0x80] sm:$0xff] %v641_v54  ;;  %v644_v58 = vadd.f32 %v1195_v18, %v643_v57 }
 0x22d   :  { %722 = vst [vmem:[#allocation8 + $0x98] sm:$0xff] %v652_v56 }
 0x22e   :  { %720 = vst [vmem:[#allocation8 + $0x88] sm:$0xff] %v644_v58 }
 0x230   :  { %v921_v59 = vpop.f32.mrb[20].mxu1 }
 0x231   :  { %v665_v60 = vadd.f32 %v921_v59, %v1195_v18  ;;  %v656_v61 = vpop.f32.mrb[21].mxu1 }
 0x232   :  { %v657_v62 = vadd.f32 %v1195_v18, %v656_v61  ;;  %v922_v63 = vpop.f32.mrb[22].mxu1 }
 0x233   :  { %725 = vst [vmem:[#allocation8 + $0xb0] sm:$0xff] %v665_v60  ;;  %v668_v0 = vadd.f32 %v922_v63, %v1195_v18  ;;  %v659_v1 = vpop.f32.mrb[23].mxu1 }
 0x234   :  { %723 = vst [vmem:[#allocation8 + $0xa0] sm:$0xff] %v657_v62  ;;  %v660_v2 = vadd.f32 %v1195_v18, %v659_v1 }
 0x235   :  { %726 = vst [vmem:[#allocation8 + $0xb8] sm:$0xff] %v668_v0 }
 0x236   :  { %724 = vst [vmem:[#allocation8 + $0xa8] sm:$0xff] %v660_v2 }
 0x238   :  { %v925_v3 = vpop.f32.mrb[24].mxu1 }
 0x239   :  { %v681_v4 = vadd.f32 %v925_v3, %v1195_v18  ;;  %v672_v5 = vpop.f32.mrb[25].mxu1 }
 0x23a   :  { %v673_v6 = vadd.f32 %v1195_v18, %v672_v5  ;;  %v926_v7 = vpop.f32.mrb[26].mxu1 }
 0x23b   :  { %729 = vst [vmem:[#allocation8 + $0xd0] sm:$0xff] %v681_v4  ;;  %v684_v8 = vadd.f32 %v926_v7, %v1195_v18  ;;  %v675_v9 = vpop.f32.mrb[27].mxu1 }
 0x23c   :  { %727 = vst [vmem:[#allocation8 + $0xc0] sm:$0xff] %v673_v6  ;;  %v676_v10 = vadd.f32 %v1195_v18, %v675_v9 }
 0x23d   :  { %730 = vst [vmem:[#allocation8 + $0xd8] sm:$0xff] %v684_v8 }
 0x23e   :  { %728 = vst [vmem:[#allocation8 + $0xc8] sm:$0xff] %v676_v10 }
 0x240   :  { %v929_v11 = vpop.f32.mrb[28].mxu1 }
 0x241   :  { %v697_v12 = vadd.f32 %v929_v11, %v1195_v18  ;;  %v688_v13 = vpop.f32.mrb[29].mxu1 }
 0x242   :  { %v689_v14 = vadd.f32 %v1195_v18, %v688_v13  ;;  %v930_v15 = vpop.f32.mrb[30].mxu1 }
 0x243   :  { %733 = vst [vmem:[#allocation8 + $0xf0] sm:$0xff] %v697_v12  ;;  %v700_v16 = vadd.f32 %v930_v15, %v1195_v18  ;;  %v691_v17 = vpop.f32.mrb[31].mxu1 }
 0x244   :  { %731 = vst [vmem:[#allocation8 + $0xe0] sm:$0xff] %v689_v14  ;;  %v692_v19 = vadd.f32 %v1195_v18, %v691_v17 }
 0x245   :  { %734 = vst [vmem:[#allocation8 + $0xf8] sm:$0xff] %v700_v16 }
 0x246   :  { %732 = vst [vmem:[#allocation8 + $0xe8] sm:$0xff] %v692_v19 }
 0x247   :  { %1048 = shalt.err (!%p1045_p0)
}
 0x248   :  { %s1049_s10 = scalar_lea.hbm %s1246_s5, 4096 }
 0x249   :  { %p1050_p1 = scmp.ne.s32.totalorder %s1246_s5, %s1049_s10  ;;  %p1053_p2 = scmp.lt.u32.totalorder %s1049_s10, %s1246_s5 }
 0x24b   :  { %p1055_p3 = pnand %p1053_p2, %p1050_p1 }
 0x24d   :  { %1058 = shalt.err (!%p1055_p3)
}
 0x24e   :  { %s1071_s15 = smov 128   ;;  %s1072_s16 = smov 8  }
 0x24f   :  { %746 = dma.vmem_to_hbm [thread:$0]  %s741_s6, 4096, %s1246_s5, [#allocation4], %s1071_s15, %s1071_s15, %s1072_s16  }
 0x250   :  { %1063 = dma.done.wait [#allocation4], 4096  }
 0x251   :  { %1064 = vsyncadd [#allocation4], 4294963200 }
 0x252   :  { %750 = vsyncpa [#allocation3], 1 }
 0x253   :  { %751 = vsyncpa [#allocation6], 1 }
 0x254   :  { %752 = vsyncpa [#allocation4], 1 }

</bundles_post_ra>
